<compile_context>
chip_gen: v7x
topology: tpu7x:2x2x1
jax: 0.10.0
libtpu: 0.0.40
codegen_flags: <defaults>
</compile_context>

<pallas_src>
import math

import jax
import jax.numpy as jnp
from jax import lax
from jax.experimental import pallas as pl
from jax.experimental.pallas import tpu as pltpu


_VMEM_LIMIT = 64 * 1024 * 1024   # > default scoped VMEM on v5e/v6e, <= v7x physical


# --------------------------------------------------------------------------
# Tiled linear kernel:  y = x @ w + b
# --------------------------------------------------------------------------

def _linear_kernel(x_ref, w_ref, b_ref, o_ref, acc_ref):
    k = pl.program_id(2)

    @pl.when(k == 0)
    def _():
        acc_ref[...] = jnp.zeros_like(acc_ref)

    acc_ref[...] += jnp.dot(x_ref[...], w_ref[...],
                            preferred_element_type=jnp.float32)

    @pl.when(k == pl.num_programs(2) - 1)
    def _():
        o_ref[...] = (acc_ref[...] + b_ref[...].astype(jnp.float32)
                      ).astype(o_ref.dtype)


def _round_up(x, m):
    return (x + m - 1) // m * m


def _pick_tile(dim, cap, align):
    """Largest power-of-two fraction of `cap` dividing `dim` (or the full dim)."""
    if dim <= cap:
        return dim
    t = cap
    while dim % t:
        t //= 2
    if t % align:
        # TODO(synk): pad this axis instead of falling back to an untiled block.
        return dim
    return t


def pallas_linear(x, w, b, *, tm_cap=256, tn_cap=256, tk_cap=1024):
    """x: (M, K), w: (K, N), b: (N,) -> x @ w + b, shape (M, N)."""
    M, K = x.shape
    N = w.shape[1]
    # Pad the row dim so the M axis always tiles cleanly (the untiled fallback
    # would otherwise make the x / acc blocks arbitrarily large for odd B*T).
    tm = min(tm_cap, _round_up(M, 8))
    Mp = _round_up(M, tm)
    if Mp != M:
        x = jnp.pad(x, ((0, Mp - M), (0, 0)))
    tn = _pick_tile(N, tn_cap, 128)
    tk = _pick_tile(K, tk_cap, 128)
    grid = (Mp // tm, N // tn, K // tk)
    out = pl.pallas_call(
        _linear_kernel,
        out_shape=jax.ShapeDtypeStruct((Mp, N), x.dtype),
        grid=grid,
        in_specs=[
            pl.BlockSpec((tm, tk), lambda i, j, k: (i, k)),
            pl.BlockSpec((tk, tn), lambda i, j, k: (k, j)),
            pl.BlockSpec((1, tn), lambda i, j, k: (0, j)),
        ],
        out_specs=pl.BlockSpec((tm, tn), lambda i, j, k: (i, j)),
        scratch_shapes=[pltpu.VMEM((tm, tn), jnp.float32)],
        compiler_params=pltpu.CompilerParams(
            dimension_semantics=("parallel", "parallel", "arbitrary"),
            vmem_limit_bytes=_VMEM_LIMIT),
    )(x, w, b.reshape(1, N))
    return out[:M] if Mp != M else out


# --------------------------------------------------------------------------
# Fused AR + MA causal attention kernel, tiled over query rows
# --------------------------------------------------------------------------

def _softmax_rows(scores, mask, *, zero_fully_masked=False):
    """Row-wise softmax of f32 `scores` restricted to boolean `mask`."""
    masked = jnp.where(mask, scores, jnp.float32(-1e30))
    m = jnp.max(masked, axis=-1, keepdims=True)
    # Masked entries underflow to 0 as long as the row has one valid key.
    p = jnp.exp(masked - m)
    if zero_fully_masked:
        p = jnp.where(mask, p, 0.0)                    # fully-masked rows -> 0
    d = jnp.sum(p, axis=-1, keepdims=True)
    if zero_fully_masked:
        d = d + (d == 0.0).astype(jnp.float32)
    r = pl.reciprocal(d, approx=True)                  # EUP estimate ...
    r = r * (2.0 - d * r)                              # ... + 2 Newton steps
    r = r * (2.0 - d * r)
    return p * r


def _make_arma_attn_kernel(n_head, tq, T, C):
    hd = C // n_head
    scale = 1.0 / math.sqrt(hd)
    dn = (((1,), (1,)), ((), ()))        # contract last dims, no transposes

    def kernel(qkk2_ref, x_ref, o_ref, e_ref):
        # qkk2_ref: (T, 3C)  [q | k | k2] for this batch (resident across tiles)
        # x_ref:    (T, C)   == v for this batch
        # o_ref:    (tq, C)  lane-dense output block (y + y2)
        # e_ref:    (T, C)   persistent residual scratch, built tile by tile
        i = pl.program_id(1)
        s = i * tq
        if tq % 8 == 0:
            s = pl.multiple_of(s, 8)

        # e rows beyond the current tile are never selected by the strict
        # mask, but 0 * NaN = NaN, so clear the scratch once per batch.
        @pl.when(i == 0)
        def _():
            e_ref[...] = jnp.zeros_like(e_ref)

        # Masks for this q tile (shared across heads): a single iota pair.
        row_g = s + lax.broadcasted_iota(jnp.int32, (tq, T), 0)
        col = lax.broadcasted_iota(jnp.int32, (tq, T), 1)
        delta = row_g - col
        causal = delta >= 0              # AR:  key j <= query i
        strict = delta >= 1              # MA:  key j <= query i - 1

        nxt = jnp.minimum(s + tq, T - 1)   # safe read of row s+tq (see below)

        # TODO(synk): causal skip -- restrict the key range to the prefix of
        # the current q tile instead of scoring all T keys.
        # n_head is small & static: the unrolled python loop keeps all heads in
        # one scheduling region.
        for h in range(n_head):
            c0 = h * hd
            q = qkk2_ref[pl.ds(s, tq), c0:c0 + hd]            # (tq, hd)
            k = qkk2_ref[:, C + c0:C + c0 + hd]               # (T, hd)
            k2 = qkk2_ref[:, 2 * C + c0:2 * C + c0 + hd]      # (T, hd)
            v = x_ref[:, c0:c0 + hd]                          # (T, hd)

            # ---- AR attention: y = softmax(q k^T / sqrt(hd)) v
            s1 = lax.dot_general(q, k, dn,
                                 preferred_element_type=jnp.float32) * scale
            a1 = _softmax_rows(s1, causal)
            y = jnp.dot(a1.astype(v.dtype), v,
                        preferred_element_type=jnp.float32)   # (tq, hd) f32

            # ---- AR residual e[j] = v[j+1] - y[j], rows s .. s+tq-1 of the
            # persistent scratch.  The last row needs v[s+tq]; on the last
            # tile that row does not exist -- the read is clamped to T-1 and
            # the garbage e row is never selected by the strict mask.
            v_hi = x_ref[pl.ds(s + 1, tq - 1), c0:c0 + hd].astype(jnp.float32)
            e_ref[pl.ds(s, tq - 1), c0:c0 + hd] = (
                v_hi - y[:tq - 1]).astype(e_ref.dtype)
            v_last = x_ref[pl.ds(nxt, 1), c0:c0 + hd].astype(jnp.float32)
            e_ref[pl.ds(s + tq - 1, 1), c0:c0 + hd] = (
                v_last - y[tq - 1:]).astype(e_ref.dtype)

            # ---- MA attention on e (strictly causal; row 0 has no keys -> 0)
            s2 = lax.dot_general(q, k2, dn,
                                 preferred_element_type=jnp.float32) * scale
            a2 = _softmax_rows(s2, strict, zero_fully_masked=True)
            e_all = e_ref[:, c0:c0 + hd]                      # (T, hd)
            y2 = jnp.dot(a2.astype(e_all.dtype), e_all,
                         preferred_element_type=jnp.float32)

            # c_proj(y) + c_proj(y2) == (y + y2) @ W_proj + 2 b_proj, so emit
            # y + y2.  The out block is (tq, C), so the HBM write is lane-dense.
            o_ref[:, c0:c0 + hd] = (y + y2).astype(o_ref.dtype)

    return kernel


def _pick_q_tile(T, cap):
    if T <= cap:
        return T
    for t in range(cap, 7, -1):
        if T % t == 0 and t % 8 == 0:
            return t
    # TODO(synk): pad T (and mask the tail rows) for awkward sequence lengths.
    return T


def pallas_arma_attention(qkk2, x, n_head, *, q_tile_cap=256):
    """qkk2: (B, T, 3C) fused [q|k|k2] projection, x: (B, T, C) == v.

    Returns y + y2 in (B, T, C) layout (heads packed along the channel dim).
    """
    B, T, C3 = qkk2.shape
    C = C3 // 3
    tq = _pick_q_tile(T, q_tile_cap)
    nq = T // tq
    kernel = _make_arma_attn_kernel(n_head, tq, T, C)
    return pl.pallas_call(
        kernel,
        out_shape=jax.ShapeDtypeStruct((B, T, C), x.dtype),
        grid=(B, nq),
        in_specs=[
            pl.BlockSpec((None, T, 3 * C), lambda b, i: (b, 0, 0)),
            pl.BlockSpec((None, T, C), lambda b, i: (b, 0, 0)),
        ],
        out_specs=pl.BlockSpec((None, tq, C), lambda b, i: (b, i, 0)),
        scratch_shapes=[pltpu.VMEM((T, C), x.dtype)],   # persistent e buffer
        compiler_params=pltpu.CompilerParams(
            # batch axis feeds megacore; the q-tile axis carries the e-scratch
            # dependency and must stay sequential.
            dimension_semantics=("parallel", "arbitrary"),
            vmem_limit_bytes=_VMEM_LIMIT),
    )(qkk2, x)


# --------------------------------------------------------------------------
# Layer forward (mirrors CausalARMAAttention.forward, eval mode)
# --------------------------------------------------------------------------

def causal_self_attention_arma(params, x, n_head, q_tile_cap=256):
    """x: (B, T, C) -> (B, T, C)."""
    B, T, C = x.shape

    # Fused [q | k | k2] projection: read x from HBM once, one wide MXU matmul.
    # (Applying k2 to all T rows is equivalent: the last row is never used.)
    qkk2 = pallas_linear(x.reshape(B * T, C), params["w_qkk2"], params["b_qkk2"])
    qkk2 = qkk2.reshape(B, T, 3 * C)           # reshape only -- no transposes

    y_sum = pallas_arma_attention(qkk2, x, n_head, q_tile_cap=q_tile_cap)

    out = pallas_linear(y_sum.reshape(B * T, C), params["w_proj"],
                        2.0 * params["b_proj"])
    return out.reshape(B, T, C)


def causal_arma_attention(params, queries, keys=None, values=None,
                          attn_mask=None, *, n_heads, q_tile_cap=256):
    """CausalARMAAttention.forward (output_attention=False); keys/values/mask unused."""
    B, L, H, E = queries.shape
    x = queries.reshape(B, L, H * E)
    out = causal_self_attention_arma(params, x, n_heads, q_tile_cap)
    return out.reshape(B, L, H, E), None


# --------------------------------------------------------------------------
# Parameter init (deterministic, nn.Linear-style uniform)
# --------------------------------------------------------------------------

def init_params(key, d_model, n_heads):
    def linear_init(k, fan_in, fan_out):
        kw, kb = jax.random.split(k)
        lim = 1.0 / math.sqrt(fan_in)
        w = jax.random.uniform(kw, (fan_in, fan_out), jnp.float32, -lim, lim)
        b = jax.random.uniform(kb, (fan_out,), jnp.float32, -lim, lim)
        return w, b

    k1, k2, k3 = jax.random.split(key, 3)
    w_attn, b_attn = linear_init(k1, d_model, 2 * d_model)    # c_attn -> [q|k]
    w_k2, b_k2 = linear_init(k2, d_model, d_model)            # k2
    w_proj, b_proj = linear_init(k3, d_model, d_model)        # c_proj
    return {
        "w_attn": w_attn, "b_attn": b_attn,
        "w_k2": w_k2, "b_k2": b_k2,
        "w_proj": w_proj, "b_proj": b_proj,
        # fused weights consumed by the Pallas projection kernel
        "w_qkk2": jnp.concatenate([w_attn, w_k2], axis=1),    # (C, 3C)
        "b_qkk2": jnp.concatenate([b_attn, b_k2], axis=0),    # (3C,)
    }


# --------------------------------------------------------------------------
# Pure-JAX reference (mirrors the PyTorch forward, eval-mode dropout)
# --------------------------------------------------------------------------

def _reference(params, queries, n_heads):
    B, L, H, E = queries.shape
    C, T = H * E, L
    hd = C // n_heads
    hi = lax.Precision.HIGHEST
    x = queries.reshape(B, T, C)

    qk = x @ params["w_attn"] + params["b_attn"]
    q, k = qk[..., :C], qk[..., C:]
    v = x

    def heads(t, length):
        return t.reshape(B, length, n_heads, hd).transpose(0, 2, 1, 3)

    qh, kh, vh = heads(q, T), heads(k, T), heads(v, T)

    def sdpa(q_, k_, v_, m):
        s = jnp.einsum("bhld,bhsd->bhls", q_, k_, precision=hi) / math.sqrt(hd)
        s = jnp.where(m, s, -jnp.inf)
        a = jax.nn.softmax(s, axis=-1)
        return jnp.einsum("bhls,bhsd->bhld", a, v_, precision=hi)

    mask = jnp.tril(jnp.ones((T, T), bool))
    y = sdpa(qh, kh, vh, mask)

    e = vh[:, :, 1:, :] - y[:, :, :-1, :]
    k2h = heads(x[:, :-1] @ params["w_k2"] + params["b_k2"], T - 1)
    q2 = qh[:, :, 1:, :]
    mask2 = jnp.tril(jnp.ones((T - 1, T - 1), bool))
    y2 = sdpa(q2, k2h, e, mask2)
    y2 = jnp.concatenate([jnp.zeros_like(y2[:, :, :1, :]), y2], axis=2)

    yc = y.transpose(0, 2, 1, 3).reshape(B, T, C)
    y2c = y2.transpose(0, 2, 1, 3).reshape(B, T, C)
    out = (yc @ params["w_proj"] + params["b_proj"]) \
        + (y2c @ params["w_proj"] + params["b_proj"])
    return out.reshape(B, L, H, E), None


# --------------------------------------------------------------------------

if __name__ == "__main__":
    # ---- primary test: small shapes implied by the module interface
    B, L, n_heads, E = 2, 8, 4, 8            # d_model = n_heads * E = 32
    d_model = n_heads * E

    key = jax.random.PRNGKey(0)
    kp, kq, kk, kv = jax.random.split(key, 4)
    params = init_params(kp, d_model, n_heads)
    queries = jax.random.normal(kq, (B, L, n_heads, E), jnp.float32)
    keys = jax.random.normal(kk, (B, L, n_heads, E), jnp.float32)
    values = jax.random.normal(kv, (B, L, n_heads, E), jnp.float32)

    out, attn = causal_arma_attention(params, queries, keys, values, None,
                                      n_heads=n_heads)
    out = jax.block_until_ready(out)

    ref, _ = _reference(params, queries, n_heads)
    assert out.shape == (B, L, n_heads, E)
    assert attn is None
    # tolerance covers MXU accumulation-order differences vs the XLA reference
    assert jnp.allclose(out, ref, atol=1e-3, rtol=1e-3), "mismatch vs reference"

    # ---- secondary test: exercises the multi-q-tile path (nq > 1) and the
    # sequential e-scratch carry across tiles.
    B2, L2, H2, E2 = 2, 32, 2, 8             # d_model = 16, tq = 8 -> 4 tiles
    d2 = H2 * E2
    kp2, kq2 = jax.random.split(jax.random.PRNGKey(1))
    params2 = init_params(kp2, d2, H2)
    queries2 = jax.random.normal(kq2, (B2, L2, H2, E2), jnp.float32)
    out2, _ = causal_arma_attention(params2, queries2, None, None, None,
                                    n_heads=H2, q_tile_cap=8)
    out2 = jax.block_until_ready(out2)
    ref2, _ = _reference(params2, queries2, H2)
    assert jnp.allclose(out2, ref2, atol=1e-3, rtol=1e-3), "tiled mismatch"

    print("KERNEL_OK")
</pallas_src>

<mosaic_0001>
module attributes {stable_mosaic.version = 11 : i64} {
  func.func @_linear_kernel(%arg0: i32, %arg1: i32, %arg2: i32, %arg3: memref<16x32xf32, #tpu.memory_space<vmem>>, %arg4: memref<32x96xf32, #tpu.memory_space<vmem>>, %arg5: memref<1x96xf32, #tpu.memory_space<vmem>>, %arg6: memref<16x96xf32, #tpu.memory_space<vmem>>, %arg7: memref<16x96xf32, #tpu.memory_space<vmem>>) attributes {dimension_semantics = [#tpu.dimension_semantics<parallel>, #tpu.dimension_semantics<parallel>, #tpu.dimension_semantics<arbitrary>], iteration_bounds = array<i64: 1, 1, 1>, scalar_prefetch = 0 : i64, scratch_operands = 1 : i64, tpu.core_type = #tpu.core_type<tc>, window_params = [{transform_indices = @transform_0, window_bounds = array<i64: 16, 32>}, {transform_indices = @transform_1, window_bounds = array<i64: 32, 96>}, {transform_indices = @transform_2, window_bounds = array<i64: 1, 96>}, {transform_indices = @transform_3, window_bounds = array<i64: 16, 96>}]} {
    %c0_i32 = arith.constant 0 : i32
    %0 = arith.cmpi eq, %arg2, %c0_i32 : i32
    %1 = arith.extui %0 : i1 to i32
    %c0_i32_0 = arith.constant 0 : i32
    %2 = arith.cmpi ne, %1, %c0_i32_0 : i32
    scf.if %2 {
      %cst_10 = arith.constant 0.000000e+00 : f32
      %12 = vector.broadcast %cst_10 : f32 to vector<16x96xf32>
      %c0_11 = arith.constant 0 : index
      %c0_12 = arith.constant 0 : index
      %13 = vector.load %arg7[%c0_11, %c0_12] : memref<16x96xf32, #tpu.memory_space<vmem>>, vector<16x96xf32>
      tpu.vector_store %arg7[%c0_11, %c0_12], %12 {strides = array<i32>} : memref<16x96xf32, #tpu.memory_space<vmem>>, vector<16x96xf32>,
    } else {
    }
    %c0 = arith.constant 0 : index
    %c0_1 = arith.constant 0 : index
    %3 = vector.load %arg7[%c0, %c0_1] : memref<16x96xf32, #tpu.memory_space<vmem>>, vector<16x96xf32>
    %c0_2 = arith.constant 0 : index
    %c0_3 = arith.constant 0 : index
    %4 = vector.load %arg3[%c0_2, %c0_3] : memref<16x32xf32, #tpu.memory_space<vmem>>, vector<16x32xf32>
    %c0_4 = arith.constant 0 : index
    %c0_5 = arith.constant 0 : index
    %5 = vector.load %arg4[%c0_4, %c0_5] : memref<32x96xf32, #tpu.memory_space<vmem>>, vector<32x96xf32>
    %cst = arith.constant dense<0.000000e+00> : vector<16x96xf32>
    %6 = tpu.matmul %4, %5, %cst {dimension_numbers = #tpu.dot_dimension_numbers<[1], [0], [0], [1], [0, 0, 1, 1], [], []>} : vector<16x32xf32>, vector<32x96xf32>, vector<16x96xf32> -> vector<16x96xf32>
    %7 = arith.addf %3, %6 : vector<16x96xf32>
    %c0_6 = arith.constant 0 : index
    %c0_7 = arith.constant 0 : index
    %8 = vector.load %arg7[%c0_6, %c0_7] : memref<16x96xf32, #tpu.memory_space<vmem>>, vector<16x96xf32>
    tpu.vector_store %arg7[%c0_6, %c0_7], %7 {strides = array<i32>} : memref<16x96xf32, #tpu.memory_space<vmem>>, vector<16x96xf32>,
    %c0_i32_8 = arith.constant 0 : i32
    %9 = arith.cmpi eq, %arg2, %c0_i32_8 : i32
    %10 = arith.extui %9 : i1 to i32
    %c0_i32_9 = arith.constant 0 : i32
    %11 = arith.cmpi ne, %10, %c0_i32_9 : i32
    scf.if %11 {
      %c0_10 = arith.constant 0 : index
      %c0_11 = arith.constant 0 : index
      %12 = vector.load %arg7[%c0_10, %c0_11] : memref<16x96xf32, #tpu.memory_space<vmem>>, vector<16x96xf32>
      %c0_12 = arith.constant 0 : index
      %c0_13 = arith.constant 0 : index
      %13 = vector.load %arg5[%c0_12, %c0_13] : memref<1x96xf32, #tpu.memory_space<vmem>>, vector<1x96xf32>
      %14 = vector.broadcast %13 : vector<1x96xf32> to vector<16x96xf32>
      %15 = arith.addf %12, %14 : vector<16x96xf32>
      %c0_14 = arith.constant 0 : index
      %c0_15 = arith.constant 0 : index
      %16 = vector.load %arg6[%c0_14, %c0_15] : memref<16x96xf32, #tpu.memory_space<vmem>>, vector<16x96xf32>
      tpu.vector_store %arg6[%c0_14, %c0_15], %15 {strides = array<i32>} : memref<16x96xf32, #tpu.memory_space<vmem>>, vector<16x96xf32>,
    } else {
    }
    return
  }
  func.func @transform_0(%arg0: i32, %arg1: i32, %arg2: i32) -> (i32, i32) {
    %c0_i32 = arith.constant 0 : i32
    return %arg0, %arg2 : i32, i32
  }
  func.func @transform_1(%arg0: i32, %arg1: i32, %arg2: i32) -> (i32, i32) {
    %c0_i32 = arith.constant 0 : i32
    return %arg2, %arg1 : i32, i32
  }
  func.func @transform_2(%arg0: i32, %arg1: i32, %arg2: i32) -> (i32, i32) {
    %c0_i32 = arith.constant 0 : i32
    %c0_i32_0 = arith.constant 0 : i32
    return %c0_i32, %arg1 : i32, i32
  }
  func.func @transform_3(%arg0: i32, %arg1: i32, %arg2: i32) -> (i32, i32) {
    %c0_i32 = arith.constant 0 : i32
    return %arg0, %arg1 : i32, i32
  }
}

</mosaic_0001>

<bundles_post_ra>
// kernel: tpu_custom_call.1
= control target key start
LH: loop header
LB: loop body
LE: loop exit
PB: predicated region body
PF: predicated region fallthrough
CT: control target
= control target key end

     0   :  { %8 = vsyncpa [#allocation4], 0  ;;  %s416_s0 = inlined_call_operand.hbm [shape: f32[16,32], index: 0, kind: input, shape index: {}]   ;;  %s417_s1 = inlined_call_operand.hbm [shape: f32[32,96], index: 1, kind: input, shape index: {}]   ;;  %s418_s2 = inlined_call_operand.hbm [shape: f32[1,96], index: 2, kind: input, shape index: {}]   ;;  %s419_s3 = inlined_call_operand.hbm [shape: f32[16,96], index: 3, kind: output, shape index: {}]  }
   0x1   :  { %9 = vsyncpa [#allocation7], 0 }
   0x2   :  { %10 = vsyncpa [#allocation5], 0  ;;  %s319_s12 = smov [#allocation6]   ;;  %s320_s14 = smov [#allocation3]  }
   0x3   :  { %s28_s13 = sshll.u32 %s319_s12, 4  ;;  %s16_s15 = sshll.u32 %s320_s14, 4  ;;  %s29_s13 = int_to_ptr.vmem [resolvable:$true] %s28_s13  ;;  %s346_s15 = int_to_ptr.vmem [resolvable:$true] %s16_s15 }
   0x4   :  { %s225_s18 = scalar_lea.hbm %s417_s1, 512 }
   0x5   :  { %p226_p0 = scmp.ne.s32.totalorder %s417_s1, %s225_s18  ;;  %p229_p1 = scmp.lt.u32.totalorder %s225_s18, %s417_s1 }
   0x7   :  { %p231_p2 = pnand %p229_p1, %p226_p0 }
   0x9   :  { %234 = shalt.err (!%p231_p2)
}
   0xa   :  { %s235_s23 = scalar_lea.vmem %s29_s13, 512  ;;  %p240_p4 = scmp.lt.s32.totalorder %s29_s13, %s29_s13 }
   0xb   :  { %p236_p3 = scmp.ne.s32.totalorder %s29_s13, %s235_s23  ;;  %p241_p5 = scmp.lt.s32.totalorder %s235_s23, %s235_s23 }
   0xd   :  { %p242_p6 = por %p241_p5, %p240_p4 }
   0xf   :  { %p243_p7 = pnand %p242_p6, %p236_p3 }
  0x11   :  { %246 = shalt.err (!%p243_p7)
}
  0x12   :  { %s321_s24 = smov 128   ;;  %s322_s25 = smov 8  }
  0x13   :  { %34 = dma.hbm_to_vmem [thread:$0]  %s417_s1, 512, %s29_s13, [#allocation7], %s321_s24, %s321_s24, %s322_s25  }
  0x14   :  { %s247_s30 = scalar_lea.hbm %s416_s0, 256 }
  0x15   :  { %p248_p8 = scmp.ne.s32.totalorder %s416_s0, %s247_s30  ;;  %p251_p9 = scmp.lt.u32.totalorder %s247_s30, %s416_s0 }
  0x17   :  { %p253_p10 = pnand %p251_p9, %p248_p8 }
  0x19   :  { %256 = shalt.err (!%p253_p10)
}
  0x1a   :  { %s257_s8 = scalar_lea.vmem %s346_s15, 256  ;;  %p262_p12 = scmp.lt.s32.totalorder %s346_s15, %s346_s15 }
  0x1b   :  { %p258_p11 = scmp.ne.s32.totalorder %s346_s15, %s257_s8  ;;  %p263_p13 = scmp.lt.s32.totalorder %s257_s8, %s257_s8 }
  0x1d   :  { %p264_p0 = por %p263_p13, %p262_p12 }
  0x1f   :  { %p265_p1 = pnand %p264_p0, %p258_p11 }
  0x21   :  { %268 = shalt.err (!%p265_p1)
}
  0x22   :  { %22 = dma.hbm_to_vmem [thread:$0]  %s416_s0, 256, %s346_s15, [#allocation4], %s321_s24, %s321_s24, %s322_s25  }
  0x23   :  { %s323_s10 = smov [#allocation8]   ;;  %s269_s14 = scalar_lea.hbm %s418_s2, 16 }
  0x24   :  { %s41_s11 = sshll.u32 %s323_s10, 4  ;;  %p270_p2 = scmp.ne.s32.totalorder %s418_s2, %s269_s14  ;;  %s42_s11 = int_to_ptr.vmem [resolvable:$true] %s41_s11 }
  0x25   :  { %p273_p3 = scmp.lt.u32.totalorder %s269_s14, %s418_s2 }
  0x27   :  { %p275_p4 = pnand %p273_p3, %p270_p2 }
  0x29   :  { %278 = shalt.err (!%p275_p4)
}
  0x2a   :  { %s279_s20 = scalar_lea.vmem %s42_s11, 16  ;;  %s283_s0 = scalar_lea.vmem %s42_s11, 32 }
  0x2b   :  { %p280_p5 = scmp.ne.s32.totalorder %s42_s11, %s279_s20  ;;  %p284_p6 = scmp.lt.s32.totalorder %s42_s11, %s42_s11 }
  0x2c   :  { %p285_p7 = scmp.lt.s32.totalorder %s283_s0, %s279_s20 }
  0x2e   :  { %p286_p8 = por %p285_p7, %p284_p6 }
  0x30   :  { %p287_p9 = pnand %p286_p8, %p280_p5 }
  0x32   :  { %290 = shalt.err (!%p287_p9)
}
  0x33   :  { %44 = dma.hbm_to_vmem [thread:$0]  %s418_s2, 16, %s42_s11, [#allocation7]  }
  0x34   :  { %313 = dma.done.wait [#allocation4], 256  }
  0x35   :  { %314 = vsyncadd [#allocation4], 4294967040 }
  0x36   :  { %315 = dma.done.wait [#allocation7], 528  }
  0x37   :  { %316 = vsyncadd [#allocation7], 4294966768  ;;  %vm58_vm0 = vcmask 785408   ;;  %v324_v0 = vmov 0.0   ;;  %vm69_vm1 = vcmask 261120   ;;  %v65_v1 = vld [vmem:[#allocation6] sm:$0xff] }
  0x38   :  { %60 = vst.msk [vmem:[#allocation2 + $0x8] sm:$0xff] %vm58_vm0, %v324_v0  ;;  %59 = vst.msk [vmem:[#allocation2] sm:$0xff] %vm58_vm0, %v324_v0  ;;  %v66_v2 = vld [vmem:[#allocation6 + $0x8] sm:$0xff]  ;;  %v67_v3 = vld [vmem:[#allocation6 + $0x10] sm:$0xff]  ;;  %s325_s2 = smov [#allocation9]  }
  0x39   :  { %v210_v4 = vpack.c.bf16 %v66_v2, %v65_v1  ;;  %v68_v5 = vld [vmem:[#allocation6 + $0x18] sm:$0xff]  ;;  %v63_v6 = vld [vmem:[#allocation3] sm:$0xff]  ;;  %v192_v15 = vld [vmem:[#allocation8] ss:$0 sm:$0xff]  ;;  %s177_s22 = sshll.u32 %s325_s2, 4  ;;  %s178_s22 = int_to_ptr.vmem [resolvable:$true] %s177_s22 }
  0x3a   :  { %v214_v7 = vpack.c.bf16 %v68_v5, %v67_v3  ;;  %207 = vmatprep.mubr.msk.f32.mxu0 %vm69_vm1, %v63_v6  ;;  %v64_v8 = vld [vmem:[#allocation3 + $0x8] sm:$0xff]  ;;  %s291_s23 = scalar_lea.vmem %s178_s22, 256  ;;  %p296_p11 = scmp.lt.s32.totalorder %s178_s22, %s178_s22 }
  0x3b   :  { %211 = vmatprep.subr.bf16.mxu0 %v210_v4  ;;  %p292_p10 = scmp.ne.s32.totalorder %s178_s22, %s291_s23  ;;  %p297_p12 = scmp.lt.s32.totalorder %s291_s23, %s291_s23 }
  0x3c   :  { %213 = vmatpush3.bf16.msra.mxu0 %v210_v4 }
  0x3d   :  { %215 = vmatprep.subr.bf16.mxu0 %v214_v7  ;;  %p298_p13 = por %p297_p12, %p296_p11 }
  0x3f   :  { %v62_v9 = vld [vmem:[#allocation2 + $0x8] sm:$0xff]  ;;  %v61_v10 = vld [vmem:[#allocation2] sm:$0xff]  ;;  %p299_p0 = pnand %p298_p13, %p292_p10 }
  0x40   :  { %217 = vmatpush3.bf16.msra.mxu0 %v214_v7 }
  0x43   :  { %208 = vmatmul.mubr.msk.f32.vlgmr.msra.gmra.mrb[0].mxu0 %vm69_vm1, %v64_v8 }
 0x116   :  { %v209_v11 = vpop.f32.mrb[0].mxu0 }
 0x117   :  { %v152_v12 = vadd.f32 %v209_v11, %v62_v9  ;;  %v142_v13 = vpop.f32.mrb[1].mxu0 }
 0x118   :  { %v151_v14 = vadd.f32 %v142_v13, %v61_v10 }
 0x119   :  { %155 = vst.msk [vmem:[#allocation2 + $0x8] sm:$0xff] %vm58_vm0, %v152_v12 }
 0x11a   :  { %154 = vst.msk [vmem:[#allocation2] sm:$0xff] %vm58_vm0, %v151_v14 }
 0x120   :  { %v160_v16 = vld [vmem:[#allocation2 + $0x8] sm:$0xff] }
 0x121   :  { %v159_v17 = vld [vmem:[#allocation2] sm:$0xff]  ;;  %v169_v18 = vadd.f32 %v192_v15, %v160_v16 }
 0x122   :  { %v168_v19 = vadd.f32 %v192_v15, %v159_v17 }
 0x123   :  { %171 = vst.msk [vmem:[#allocation9 + $0x8] sm:$0xff] %vm58_vm0, %v169_v18 }
 0x124   :  { %170 = vst.msk [vmem:[#allocation9] sm:$0xff] %vm58_vm0, %v168_v19 }
 0x125   :  { %302 = shalt.err (!%p299_p0)
}
 0x126   :  { %s303_s28 = scalar_lea.hbm %s419_s3, 256 }
 0x127   :  { %p304_p1 = scmp.ne.s32.totalorder %s419_s3, %s303_s28  ;;  %p307_p2 = scmp.lt.u32.totalorder %s303_s28, %s419_s3 }
 0x129   :  { %p309_p3 = pnand %p307_p2, %p304_p1 }
 0x12b   :  { %312 = shalt.err (!%p309_p3)
}
 0x12c   :  { %183 = dma.vmem_to_hbm [thread:$0]  %s178_s22, 256, %s419_s3, [#allocation5], %s321_s24, %s321_s24, %s322_s25  }
 0x12d   :  { %317 = dma.done.wait [#allocation5], 256  }
 0x12e   :  { %318 = vsyncadd [#allocation5], 4294967040 }
 0x12f   :  { %187 = vsyncpa [#allocation4], 1 }
 0x130   :  { %188 = vsyncpa [#allocation7], 1 }
 0x131   :  { %189 = vsyncpa [#allocation5], 1 }

</bundles_post_ra>
